<compile_context>
chip_gen: v6e
topology: v6e:2x2x1
jax: 0.10.0
libtpu: 0.0.40
codegen_flags: <defaults>
</compile_context>

<pallas_src>
import jax
import jax.numpy as jnp
from jax.experimental import pallas as pl
from jax.experimental.pallas import tpu as pltpu


def _fused_linear_permute_gather_kernel(x_ref, w_ref, b_ref, o_ref):
    """Fused linear (K=2, O=1) -> permute(0,2,1) -> clamped index_select.

    x_ref: (1, 2, S_tile) f32 in VMEM   (S on the lane axis, K on sublanes)
    w_ref: (2,)           f32 in SMEM   (flattened Linear weight)
    b_ref: (1,)           f32 in SMEM
    o_ref: (1, 3, S_tile) f32 in VMEM   (lane-dense output block)
    """
    w0 = w_ref[0]
    w1 = w_ref[1]
    b = b_ref[0]
    # Linear as a VPU weighted sum on lane-dense data: no MXU, no cross-lane
    # movement (both channels are sublane slices).
    y = x_ref[:, 0, :] * w0 + x_ref[:, 1, :] * w1 + b        # (1, S_tile)
    # permute(0,2,1) -> (B, 1, S); clamped index_select([1,0,1]) replicates the
    # single row into 3 rows -> sublane broadcast, written once, lane-dense.
    o_ref[...] = jnp.broadcast_to(y[:, None, :], o_ref.shape)


def model_forward(x1, weight, bias, *, s_tile_max=2048):
    """x1: (B, S, 2) f32, weight: (1, 2) f32, bias: (1,) f32 -> (B, 3, S) f32."""
    B, S, K = x1.shape
    assert K == 2, x1.shape

    # Layout plumbing (not compute hoisting): put S on the lane axis.
    x_t = jnp.transpose(x1, (0, 2, 1))                        # (B, 2, S)

    # Pad S to a multiple of 128 (lane-dense, unmasked stores); pick an S tile
    # that keeps per-step VMEM small (fits comfortably in v7x's 64 MiB too).
    s_pad = 128 * pl.cdiv(S, 128)
    s_tile = min(s_tile_max, s_pad)
    s_pad = s_tile * pl.cdiv(s_pad, s_tile)
    if s_pad != S:
        x_t = jnp.pad(x_t, ((0, 0), (0, 0), (0, s_pad - S)))

    w_flat = weight.reshape(-1).astype(jnp.float32)           # (2,)
    b_flat = bias.reshape(-1).astype(jnp.float32)             # (1,)

    out_full = pl.pallas_call(
        _fused_linear_permute_gather_kernel,
        out_shape=jax.ShapeDtypeStruct((B, 3, s_pad), x1.dtype),
        grid=(B, s_pad // s_tile),
        in_specs=[
            pl.BlockSpec((1, 2, s_tile), lambda b, s: (b, 0, s)),     # x (B,2,S)
            pl.BlockSpec(memory_space=pltpu.MemorySpace.SMEM),        # weight (2,)
            pl.BlockSpec(memory_space=pltpu.MemorySpace.SMEM),        # bias (1,)
        ],
        out_specs=pl.BlockSpec((1, 3, s_tile), lambda b, s: (b, 0, s)),
        compiler_params=pltpu.CompilerParams(
            dimension_semantics=("parallel", "parallel")),
    )(x_t, w_flat, b_flat)

    if s_pad != S:
        out_full = out_full[:, :, :S]
    return out_full


if __name__ == "__main__":
    key = jax.random.PRNGKey(0)
    kx, kw, kb = jax.random.split(key, 3)

    # Shapes implied by the module: x1 = randn(2, 2, 2), Linear(2, 1).
    B, S, IN, OUT = 2, 2, 2, 1
    x1 = jax.random.normal(kx, (B, S, IN), dtype=jnp.float32)

    # Deterministic parameter init (uniform in [-1/sqrt(in), 1/sqrt(in)],
    # mirroring torch.nn.Linear's default init).
    bound = 1.0 / jnp.sqrt(jnp.float32(IN))
    weight = jax.random.uniform(kw, (OUT, IN), jnp.float32, -bound, bound)
    bias = jax.random.uniform(kb, (OUT,), jnp.float32, -bound, bound)

    out = model_forward(x1, weight, bias)
    jax.block_until_ready(out)

    # Pure-JAX reference of the same (clamped-gather) semantics.
    v1 = x1 @ weight.T + bias                            # (B, S, 1)
    v2 = jnp.transpose(v1, (0, 2, 1))                    # (B, 1, S)
    ref = jnp.take(v2, jnp.array([1, 0, 1], jnp.int32), axis=1, mode="clip")

    assert out.shape == (B, 3, S), out.shape
    assert bool(jnp.allclose(out, ref, rtol=1e-5, atol=1e-6))
    print("KERNEL_OK")
</pallas_src>

<mosaic_0001>
module attributes {stable_mosaic.version = 11 : i64} {
  func.func @_fused_linear_permute_gather_kernel(%arg0: i32, %arg1: i32, %arg2: memref<1x2x128xf32, #tpu.memory_space<vmem>>, %arg3: memref<2xf32, #tpu.memory_space<smem>>, %arg4: memref<1xf32, #tpu.memory_space<smem>>, %arg5: memref<1x3x128xf32, #tpu.memory_space<vmem>>) attributes {dimension_semantics = [#tpu.dimension_semantics<parallel>, #tpu.dimension_semantics<parallel>], iteration_bounds = array<i64: 2, 1>, scalar_prefetch = 0 : i64, scratch_operands = 0 : i64, tpu.core_type = #tpu.core_type<tc>, window_params = [{transform_indices = @transform_0, window_bounds = array<i64: 1, 2, 128>}, {transform_indices = @transform_1, window_bounds = array<i64: 2>}, {transform_indices = @transform_2, window_bounds = array<i64: 1>}, {transform_indices = @transform_3, window_bounds = array<i64: 1, 3, 128>}]} {
    %c0 = arith.constant 0 : index
    %0 = memref.load %arg3[%c0] : memref<2xf32, #tpu.memory_space<smem>>
    %c1 = arith.constant 1 : index
    %1 = memref.load %arg3[%c1] : memref<2xf32, #tpu.memory_space<smem>>
    %c0_0 = arith.constant 0 : index
    %2 = memref.load %arg4[%c0_0] : memref<1xf32, #tpu.memory_space<smem>>
    %c0_1 = arith.constant 0 : index
    %c0_2 = arith.constant 0 : index
    %c0_3 = arith.constant 0 : index
    %3 = vector.load %arg2[%c0_1, %c0_2, %c0_3] : memref<1x2x128xf32, #tpu.memory_space<vmem>>, vector<1x1x128xf32>
    %4 = vector.shape_cast %3 : vector<1x1x128xf32> to vector<1x128xf32>
    %5 = vector.broadcast %0 : f32 to vector<1x128xf32>
    %6 = arith.mulf %4, %5 : vector<1x128xf32>
    %c0_4 = arith.constant 0 : index
    %c1_5 = arith.constant 1 : index
    %c0_6 = arith.constant 0 : index
    %7 = vector.load %arg2[%c0_4, %c1_5, %c0_6] : memref<1x2x128xf32, #tpu.memory_space<vmem>>, vector<1x1x128xf32>
    %8 = vector.shape_cast %7 : vector<1x1x128xf32> to vector<1x128xf32>
    %9 = vector.broadcast %1 : f32 to vector<1x128xf32>
    %10 = arith.mulf %8, %9 : vector<1x128xf32>
    %11 = arith.addf %6, %10 : vector<1x128xf32>
    %12 = vector.broadcast %2 : f32 to vector<1x128xf32>
    %13 = arith.addf %11, %12 : vector<1x128xf32>
    %14 = vector.shape_cast %13 : vector<1x128xf32> to vector<1x1x128xf32>
    %15 = vector.shape_cast %14 : vector<1x1x128xf32> to vector<1x1x128xf32>
    %16 = vector.broadcast %15 : vector<1x1x128xf32> to vector<1x3x128xf32>
    %c0_7 = arith.constant 0 : index
    %c0_8 = arith.constant 0 : index
    %c0_9 = arith.constant 0 : index
    %17 = vector.load %arg5[%c0_7, %c0_8, %c0_9] : memref<1x3x128xf32, #tpu.memory_space<vmem>>, vector<1x3x128xf32>
    tpu.vector_store %arg5[%c0_7, %c0_8, %c0_9], %16 {strides = array<i32>} : memref<1x3x128xf32, #tpu.memory_space<vmem>>, vector<1x3x128xf32>,
    return
  }
  func.func @transform_0(%arg0: i32, %arg1: i32) -> (i32, i32, i32) {
    %c0_i32 = arith.constant 0 : i32
    %c0_i32_0 = arith.constant 0 : i32
    return %arg0, %c0_i32, %arg1 : i32, i32, i32
  }
  func.func @transform_1(%arg0: i32, %arg1: i32) -> i32 {
    %c0_i32 = arith.constant 0 : i32
    %c0_i32_0 = arith.constant 0 : i32
    return %c0_i32 : i32
  }
  func.func @transform_2(%arg0: i32, %arg1: i32) -> i32 {
    %c0_i32 = arith.constant 0 : i32
    %c0_i32_0 = arith.constant 0 : i32
    return %c0_i32 : i32
  }
  func.func @transform_3(%arg0: i32, %arg1: i32) -> (i32, i32, i32) {
    %c0_i32 = arith.constant 0 : i32
    %c0_i32_0 = arith.constant 0 : i32
    return %arg0, %c0_i32, %arg1 : i32, i32, i32
  }
}

</mosaic_0001>

<bundles_post_ra>
// kernel: tpu_custom_call.1
= control target key start
LH: loop header
LB: loop body
LE: loop exit
PB: predicated region body
PF: predicated region fallthrough
CT: control target
= control target key end

     0   :  { %s662_s0 = inlined_call_operand.hbm [shape: f32[2,2,128], index: 0, kind: input, shape index: {}]   ;;  %s663_s1 = inlined_call_operand.vmem [shape: f32[2], index: 1, kind: input, shape index: {}]   ;;  %s664_s2 = inlined_call_operand.<no memory space> [shape: f32[1], index: 2, kind: input, shape index: {}]   ;;  %s665_s3 = inlined_call_operand.vmem [shape: f32[2,3,128], index: 3, kind: output, shape index: {}]  }
   0x1   :  { %8 = sst [smem:[#allocation2]] %s664_s2 }
   0x2   :  { %9 = vsyncpa [#allocation4], 0 }
   0x3   :  { %11 = vsyncpa [#allocation4 + $0x1], 0 }
   0x4   :  { %12 = vsyncpa [#allocation5], 0  ;;  %s541_s14 = smov 0   ;;  %s543_s15 = smov 0  }
   0x5   :  { %s545_s16 = smov 0   ;;  %s547_s17 = smov 0  }
   0x6   :  { %s549_s18 = smov 0   ;;  %s551_s19 = smov 0  }
   0x7 LB: > { %s337_s2 = sadd.s32 4294967295, %s514_s19   ;;  %p52_p0 = scmp.ne.s32.totalorder %s498_s15, %s494_s14  ;;  %s514_s19 = sphi %s551_s19, %s18_s19   ;;  %s510_s18 = sphi %s549_s18, %s675_s18   ;;  %s506_s17 = sphi %s547_s17, %s674_s17   ;;  %s502_s16 = sphi %s545_s16, %s673_s16   ;;  %s498_s15 = sphi %s543_s15, %s672_s15   ;;  %s494_s14 = sphi %s541_s14, %s671_s14  }
   0x8   : > { %p571_p1 = scmp.eq.s32.totalorder %s337_s2, 0  ;;  %p339_p2 = scmp.ge.s32.totalorder %s514_s19, 1 }
   0x9   : > { %p133_p3 = scmp.lt.s32.totalorder %s514_s19, 3  ;;  %s146_s24 = sshll.u32 %s663_s1, 4  ;;  %s147_s24 = int_to_ptr.vmem [resolvable:$true] %s146_s24 }
   0xa   : > { %p579_p4 = por %p571_p1, %p52_p0  ;;  %s30_s27 = sadd.s32 1, %s510_s18 }
   0xb   : > { %p586_p5 = pnand %p339_p2, %p133_p3  ;;  %s39_s28 = sadd.s32 1, %s502_s16 }
   0xc   : > { %p32_p8 = scmp.ge.s32.totalorder %s30_s27, 2  ;;  %s417_s29 = scalar_lea.vmem %s147_s24, 16 }
   0xd   : > { %p357_p6 = pneg %p586_p5  ;;  %p418_p9 = scmp.ne.s32.totalorder %s147_s24, %s417_s29 }
   0xe   : > { %p425_p13 = scmp.lt.s32.totalorder %s147_s24, %s147_s24  ;;  %p426_p0 = scmp.lt.s32.totalorder %s417_s29, %s417_s29 }
   0xf   : > { %p594_p7 = pnand %p357_p6, %p571_p1 }
  0x10   : > { %p427_p2 = por %p426_p0, %p425_p13 }
  0x11   : > { %p419_p10 = pneg %p594_p7 }
  0x13   : > { %p420_p11 = pnand %p419_p10, %p418_p9 }
  0x15   : > { %p421_p12 = pneg %p420_p11 }
  0x17   : > { %p428_p3 = pnand %p427_p2, %p421_p12 }
  0x19   : > { %431 = shalt.err (!%p428_p3)
}
  0x1a   : > { %s516_s30 = smov [#allocation6]   ;;  %s677_s27 = smov (%p32_p8, %s30_s27), 0 }
  0x1b   : > { %360 = dma.vmem_to_smem (!%p594_p7), %s147_s24, 16, %s516_s30, [#allocation5]  }
  0x1c   : > { %p46_p6 = scmp.ne.s32.totalorder %s502_s16, %s498_s15  ;;  %p47_p9 = scmp.eq.s32.totalorder %s514_s19, 0 }
  0x1d   : > { %s34_s4 = ssub.s32 %s510_s18, %s677_s27  ;;  %p366_p10 = scmp.lt.s32.totalorder %s514_s19, 2 }
  0x1e   : > { %p37_p11 = scmp.eq.s32.totalorder %s34_s4, 0  ;;  %p48_p12 = por %p47_p9, %p46_p6 }
  0x1f   : > { %s160_s5 = sand.u32 1, %s502_s16   ;;  %s343_s6 = sshll.u32 %s510_s18, 5 }
  0x20   : > { %s615_s7 = scalar_select %p37_p11, %s502_s16, %s39_s28  }
  0x21   : > { %s342_s8 = sshll.u32 %s160_s5, 1  ;;  %s170_s11 = scalar_lea.hbm %s662_s0, %s343_s6 }
  0x22   : > { %s164_s12 = scalar_lea.vmem [#allocation3], %s342_s8  ;;  %p620_p7 = pnand %p366_p10, %p48_p12 }
  0x23   : > { %s172_s13 = sshll.u32 %s164_s12, 4  ;;  %s161_s2 = scalar_lea.sflag [#allocation4], %s160_s5  ;;  %s173_s13 = int_to_ptr.vmem [resolvable:$true] %s172_s13 }
  0x24   : > { %p434_p8 = pneg %p620_p7  ;;  %s445_s22 = scalar_lea.vmem %s173_s13, 32 }
  0x25   : > { %p446_p13 = scmp.ne.s32.totalorder %s173_s13, %s445_s22  ;;  %s517_s23 = smov [#allocation3]  }
  0x26   : > { %s450_s24 = sshll.u32 %s517_s23, 4  ;;  %s451_s24 = int_to_ptr.vmem [resolvable:$false] %s450_s24 }
  0x27   : > { %p448_p0 = pnand %p446_p13, %p434_p8  ;;  %s452_s26 = scalar_lea.vmem %s451_s24, 64 }
  0x28   : > { %p453_p3 = scmp.lt.s32.totalorder %s173_s13, %s451_s24  ;;  %p454_p6 = scmp.lt.s32.totalorder %s452_s26, %s445_s22 }
  0x29   : > { %p449_p2 = pneg %p448_p0 }
  0x2a   : > { %p455_p9 = por %p454_p6, %p453_p3 }
  0x2c   : > { %p456_p10 = pnand %p455_p9, %p449_p2 }
  0x2e   : > { %459 = shalt.err (!%p456_p10)
}
  0x2f   : > { %364 = dma.hbm_to_vmem [thread:$0]  (!%p620_p7), %s170_s11, 32, %s173_s13, %s161_s2  }
  0x30   : > { %181 = sbr.rel (%p586_p5) target bundleno = 75 (0x4b), region = 32  ;;  %s183_s28 = sand.u32 (!%p586_p5), 1, %s498_s15  }
  0x31   : > { %s345_s29 = sshll.u32 (!%p586_p5), %s183_s28, 1  ;;  %s184_s30 = scalar_lea.sflag (!%p586_p5), [#allocation4], %s183_s28 }
  0x32   : > { %s187_s4 = scalar_lea.vmem (!%p586_p5), [#allocation3], %s345_s29 }
  0x35   : > { %485 = dma.done.wait (%p579_p4), %s184_s30, 32  }
  0x36   : > { %487 = vsyncadd (%p579_p4), %s184_s30, 4294967264 }
  0x37   : > { %489 = dma.done.wait (%p571_p1), [#allocation5], 16  }
  0x38   : > { %491 = vsyncadd (%p571_p1), [#allocation5], 4294967280 }
  0x39   : > { %196 = sfence }
  0x3a   : > { %s224_s25 = sld [smem:[#allocation6]]  ;;  %p217_p5 = scmp.lt.s32.totalorder %s506_s17, 1  ;;  %v236_v0 = vlaneseq  ;;  %v227_v1 = vld [vmem:[%s187_s4] sm:$0x1]  ;;  %v230_v2 = vld [vmem:[%s187_s4 + $0x1] sm:$0x1] }
  0x3b   : > { %s348_s5 = sld [smem:[#allocation6 + $0x1]] }
  0x3c   : > { %s226_s6 = sld [smem:[#allocation2]]  ;;  %s679_s17 = smov (!%p217_p5, %s506_s17), 1  ;;  %v237_v4 = vshrl.u32 %v236_v0, 7 }
  0x3d   : > { %s347_s21 = sshll.u32 %s679_s17, 2 }
  0x3e   : > { %v238_v10 = vsub.s32 0, %v237_v4  ;;  %s223_s9 = scalar_lea.vmem %s665_s3, %s347_s21 }
  0x40   : > { %v228_v3 = vstv %s224_s25 }
  0x41   : > { %v229_v5 = vmul.f32 %v228_v3, %v227_v1  ;;  %v231_v6 = vstv %s348_s5 }
  0x42   : > { %v232_v7 = vmul.f32 %v231_v6, %v230_v2  ;;  %v234_v8 = vstv %s226_s6 }
  0x44   : > { %v233_v9 = vadd.f32 %v232_v7, %v229_v5 }
  0x46   : > { %v235_v11 = vadd.f32 %v234_v8, %v233_v9 }
  0x48   : > { %v239_v12 = vrot.slane %v235_v11, %v238_v10 }
  0x4a   : > { %240 = vst [vmem:[%s223_s9] sm:$0x7] %v239_v12 }
  0x4b PF: > { %s18_s19 = sadd.s32 1, %s514_s19   ;;  %s671_s14 = smov %s498_s15 }
  0x4c   : > { %p15_p1 = scmp.ge.s32.totalorder %s18_s19, 4   ;;  %s672_s15 = smov %s502_s16 }
  0x4d   : > { %s673_s16 = smov %s615_s7  ;;  %s674_s17 = smov %s510_s18 }
  0x4e   : > { %s675_s18 = smov %s677_s27  ;;  %17 = sbr.rel (!%p15_p1) target bundleno = 7 (0x7), region = 77 }
  0x53   :  { %266 = vsyncpa [#allocation4], 1 }
  0x54   :  { %268 = vsyncpa [#allocation4 + $0x1], 1 }
  0x55   :  { %269 = vsyncpa [#allocation5], 1 }
  0x56   :  { %271 = vsyncpa [#allocation5 + $0x1], 1 }

</bundles_post_ra>
